<compile_context>
chip_gen: v7x
topology: tpu7x:2x2x1
jax: 0.10.0
libtpu: 0.0.40
codegen_flags: <defaults>
</compile_context>

<pallas_src>
import functools
import math

import jax
import jax.numpy as jnp
from jax.experimental import pallas as pl
from jax.experimental.pallas import tpu as pltpu

_TILE_VMEM_BUDGET = 16 * 1024 * 1024      # target bytes of VMEM used by tiles
_VMEM_LIMIT = 48 * 1024 * 1024            # scoped VMEM limit (safe on v7x too)
_MAX_TILE_PIXELS = 16384


def _ohem_ce_kernel(logits_ref, labels_ref, loss_ref, statsf_ref, statsi_ref,
                    sum_sem, cnt_sem, *, thresh, lb_ignore):
    ji = pl.program_id(2)

    @pl.when(ji == 0)
    def _init():
        sum_sem[0] = jnp.float32(0.0)
        cnt_sem[0] = jnp.int32(0)
        cnt_sem[1] = jnp.int32(0)

    # logits block: (1, C, d, 128)  -> (C, d, 128); classes on a leading dim,
    # pixels dense on (sublane, lane).
    x = logits_ref[...][0].astype(jnp.float32)
    lbl = labels_ref[...][0, 0]                     # (d, 128) int32
    valid = lbl != lb_ignore
    safe_lbl = jnp.where(valid, lbl, 0)

    # Stable log-softmax: shift first so the raw f32 tile copy dies early and
    # `picked` is derived from the already-shifted values.
    m = jnp.max(x, axis=0, keepdims=True)           # (1, d, 128)
    xs = x - m                                      # (C, d, 128)
    cls = jax.lax.broadcasted_iota(jnp.int32, xs.shape, 0)
    picked = jnp.sum(jnp.where(cls == safe_lbl, xs, 0.0), axis=0)   # (d, 128)
    lse = jnp.log(jnp.sum(jnp.exp(xs), axis=0))                     # (d, 128)
    ce = jnp.where(valid, lse - picked, 0.0)        # (d, 128)

    loss_ref[...] = ce[jnp.newaxis]                 # sublane+lane dense store

    hard = ce > thresh
    sum_sem[0] = sum_sem[0] + jnp.sum(jnp.where(hard, ce, 0.0))
    cnt_sem[0] = cnt_sem[0] + jnp.sum(hard.astype(jnp.int32))
    cnt_sem[1] = cnt_sem[1] + jnp.sum(valid.astype(jnp.int32))

    @pl.when(ji == pl.num_programs(2) - 1)
    def _flush():
        shp = statsf_ref.shape                      # (1, 1, 8, 128)
        sub = jax.lax.broadcasted_iota(jnp.int32, shp, 2)
        lane = jax.lax.broadcasted_iota(jnp.int32, shp, 3)
        at0 = (sub == 0) & (lane == 0)
        at1 = (sub == 0) & (lane == 1)
        statsf_ref[...] = jnp.where(at0, sum_sem[0], jnp.float32(0.0))
        statsi_ref[...] = jnp.where(at0, cnt_sem[0],
                                    jnp.where(at1, cnt_sem[1], jnp.int32(0)))


def _choose_tiling(HW, C, in_bytes):
    """Pick (hw_pad, sublane_blocks_per_tile) for the (HW//128, 128) layout."""
    hw_pad = pl.cdiv(HW, 128) * 128
    m = hw_pad // 128

    # Rough per-pixel VMEM cost: double-buffered logits + f32 temps + labels/loss.
    bytes_per_px = 2 * C * in_bytes + 3 * C * 4 + 24
    max_t = (_TILE_VMEM_BUDGET // bytes_per_px) // 128 * 128
    max_t = max(1024, min(int(max_t), _MAX_TILE_PIXELS))
    max_d = max_t // 128

    if m <= max_d:
        d = m                                # whole padded row in one tile
    else:
        d = 0
        for cand in range((max_d // 8) * 8, 0, -8):   # (8,128)-legal divisors
            if m % cand == 0:
                d = cand
                break
        if d == 0:
            # No multiple-of-8 divisor; pad HW up to a multiple of a nice tile.
            d = (max_d // 8) * 8
            hw_pad = pl.cdiv(HW, d * 128) * (d * 128)
            m = hw_pad // 128
    return hw_pad, m, d


def ohem_ce_loss(logits_nchw, labels_nhw, thresh=0.7, lb_ignore=255):
    N, C, H, W = logits_nchw.shape
    HW = H * W
    P = N * HW
    in_bytes = jnp.dtype(logits_nchw.dtype).itemsize

    # Static Python threshold (no traced constants -> no ConcretizationTypeError).
    thresh_val = -math.log(float(thresh))

    hw_pad, m, d = _choose_tiling(HW, C, in_bytes)
    t_hw = d * 128
    n_tiles = m // d

    # Free views of NCHW: (N, C, HW) / (N, 1, HW); padding only when HW % 128 != 0.
    logits = logits_nchw.reshape(N, C, HW)
    labels = labels_nhw.reshape(N, 1, HW).astype(jnp.int32)
    if hw_pad != HW:
        logits = jnp.pad(logits, ((0, 0), (0, 0), (0, hw_pad - HW)))
        labels = jnp.pad(labels, ((0, 0), (0, 0), (0, hw_pad - HW)),
                         constant_values=lb_ignore)
    logits = logits.reshape(N, C, m, 128)
    labels = labels.reshape(N, 1, m, 128)

    # Megacore: if the batch axis can't feed both v7x cores, split the pixel
    # tiles into a second parallel axis.
    if N == 1 and n_tiles >= 2 and n_tiles % 2 == 0:
        g_out, g_in = 2, n_tiles // 2
    else:
        g_out, g_in = 1, n_tiles

    kernel = functools.partial(_ohem_ce_kernel,
                               thresh=thresh_val, lb_ignore=lb_ignore)

    p_pad = N * hw_pad
    cost = pl.CostEstimate(flops=(6 * C + 10) * p_pad,
                           transcendentals=(C + 1) * p_pad,
                           bytes_accessed=(C * in_bytes + 12) * p_pad)

    loss_map, stats_f, stats_i = pl.pallas_call(
        kernel,
        out_shape=(jax.ShapeDtypeStruct((N, m, 128), jnp.float32),
                   jax.ShapeDtypeStruct((N, g_out, 8, 128), jnp.float32),
                   jax.ShapeDtypeStruct((N, g_out, 8, 128), jnp.int32)),
        grid_spec=pltpu.PrefetchScalarGridSpec(
            num_scalar_prefetch=0,
            grid=(N, g_out, g_in),
            in_specs=[
                pl.BlockSpec((1, C, d, 128),
                             lambda i, jo, ji: (i, 0, jo * g_in + ji, 0)),
                pl.BlockSpec((1, 1, d, 128),
                             lambda i, jo, ji: (i, 0, jo * g_in + ji, 0)),
            ],
            out_specs=[
                pl.BlockSpec((1, d, 128),
                             lambda i, jo, ji: (i, jo * g_in + ji, 0)),
                pl.BlockSpec((1, 1, 8, 128), lambda i, jo, ji: (i, jo, 0, 0)),
                pl.BlockSpec((1, 1, 8, 128), lambda i, jo, ji: (i, jo, 0, 0)),
            ],
            scratch_shapes=[pltpu.SMEM((1,), jnp.float32),
                            pltpu.SMEM((2,), jnp.int32)]),
        compiler_params=pltpu.CompilerParams(
            dimension_semantics=("parallel", "parallel", "arbitrary"),
            vmem_limit_bytes=_VMEM_LIMIT),
        cost_estimate=cost,
    )(logits, labels)

    # Per-(batch row, pixel shard) partials -> global scalars (exact int32 counts).
    sum_hard = jnp.sum(stats_f[:, :, 0, 0])
    cnt_hard = jnp.sum(stats_i[:, :, 0, 0])
    cnt_valid = jnp.sum(stats_i[:, :, 0, 1])

    n_min = cnt_valid // 16                        # int32
    k_max = max(P // 16, 1)                        # static bound on n_min

    def hard_mean(_):
        # 0/0 = NaN when there are no hard pixels and n_min == 0
        # (matches torch.mean of an empty tensor).
        return sum_hard / cnt_hard.astype(jnp.float32)

    def topk_mean(_):
        # Materialized only when the fallback actually fires (inside lax.cond).
        # TODO(synk): replace the sort-class lax.top_k with an in-kernel loss
        # histogram + second reduction pass to find/sum the top-n_min losses.
        loss_flat = loss_map.reshape(N, hw_pad)[:, :HW].reshape(P)
        vals = jax.lax.top_k(loss_flat, k_max)[0]
        idx = jnp.arange(k_max)
        return (jnp.sum(jnp.where(idx < n_min, vals, 0.0))
                / jnp.maximum(n_min, 1).astype(jnp.float32))

    return jax.lax.cond(cnt_hard < n_min, topk_mean, hard_mean, operand=None)


def _ohem_ce_loss_ref(logits_nchw, labels_nhw, thresh=0.7, lb_ignore=255):
    """Pure-JAX reference for correctness check."""
    N, C, H, W = logits_nchw.shape
    logits = jnp.transpose(logits_nchw, (0, 2, 3, 1)).reshape(-1, C)
    logits = logits.astype(jnp.float32)
    labels = labels_nhw.reshape(-1).astype(jnp.int32)
    valid = labels != lb_ignore
    lse = jax.scipy.special.logsumexp(logits, axis=1)
    picked = jnp.take_along_axis(
        logits, jnp.where(valid, labels, 0)[:, None], axis=1)[:, 0]
    ce = jnp.where(valid, lse - picked, 0.0)
    n_min = jnp.sum(valid) // 16
    th = -math.log(float(thresh))
    hard = ce > th
    cnt_hard = jnp.sum(hard)
    mean_hard = jnp.sum(jnp.where(hard, ce, 0.0)) / cnt_hard.astype(jnp.float32)
    sorted_desc = jnp.sort(ce)[::-1]
    topk_mean = (jnp.sum(jnp.where(jnp.arange(ce.shape[0]) < n_min,
                                   sorted_desc, 0.0))
                 / jnp.maximum(n_min, 1).astype(jnp.float32))
    return jnp.where(cnt_hard < n_min, topk_mean, mean_hard)


if __name__ == "__main__":
    key = jax.random.PRNGKey(0)
    k1, k2, k3 = jax.random.split(key, 3)

    N, C, H, W = 2, 4, 16, 16
    logits = jax.random.normal(k1, (N, C, H, W), dtype=jnp.float32)
    labels = jax.random.randint(k2, (N, H, W), 0, C, dtype=jnp.int32)
    # sprinkle in some ignored pixels (label 255)
    ignore_mask = jax.random.bernoulli(k3, p=0.2, shape=(N, H, W))
    labels = jnp.where(ignore_mask, 255, labels)

    fn = jax.jit(ohem_ce_loss)

    # Case 1: random logits -> plenty of hard pixels (threshold branch).
    out = jax.block_until_ready(fn(logits, labels))
    ref = jax.block_until_ready(_ohem_ce_loss_ref(logits, labels))
    assert jnp.allclose(out, ref, rtol=1e-5, atol=1e-6), (out, ref)

    # Case 2: near-perfect logits -> few hard pixels (top-k fallback branch).
    onehot = jax.nn.one_hot(jnp.clip(labels, 0, C - 1), C, dtype=jnp.float32)
    easy_logits = jnp.transpose(onehot, (0, 3, 1, 2)) * 10.0 + 0.01 * logits
    out2 = jax.block_until_ready(fn(easy_logits, labels))
    ref2 = jax.block_until_ready(_ohem_ce_loss_ref(easy_logits, labels))
    assert jnp.allclose(out2, ref2, rtol=1e-5, atol=1e-6), (out2, ref2)

    print("KERNEL_OK")
</pallas_src>

<mosaic_0001>
module attributes {stable_mosaic.version = 11 : i64} {
  func.func @_ohem_ce_kernel(%arg0: i32, %arg1: i32, %arg2: i32, %arg3: memref<1x4x2x128xf32, #tpu.memory_space<vmem>>, %arg4: memref<1x1x2x128xi32, #tpu.memory_space<vmem>>, %arg5: memref<1x2x128xf32, #tpu.memory_space<vmem>>, %arg6: memref<1x1x8x128xf32, #tpu.memory_space<vmem>>, %arg7: memref<1x1x8x128xi32, #tpu.memory_space<vmem>>, %arg8: memref<1xf32, #tpu.memory_space<smem>>, %arg9: memref<2xi32, #tpu.memory_space<smem>>) attributes {dimension_semantics = [#tpu.dimension_semantics<parallel>, #tpu.dimension_semantics<parallel>, #tpu.dimension_semantics<arbitrary>], iteration_bounds = array<i64: 2, 1, 1>, scalar_prefetch = 0 : i64, scratch_operands = 2 : i64, tpu.core_type = #tpu.core_type<tc>, window_params = [{transform_indices = @transform_0, window_bounds = array<i64: 1, 4, 2, 128>}, {transform_indices = @transform_1, window_bounds = array<i64: 1, 1, 2, 128>}, {transform_indices = @transform_2, window_bounds = array<i64: 1, 2, 128>}, {transform_indices = @transform_3, window_bounds = array<i64: 1, 1, 8, 128>}, {transform_indices = @transform_4, window_bounds = array<i64: 1, 1, 8, 128>}]} {
    %c0_i32 = arith.constant 0 : i32
    %0 = arith.cmpi eq, %arg2, %c0_i32 : i32
    %1 = arith.extui %0 : i1 to i32
    %c0_i32_0 = arith.constant 0 : i32
    %2 = arith.cmpi ne, %1, %c0_i32_0 : i32
    scf.if %2 {
      %cst_28 = arith.constant 0.000000e+00 : f32
      %c0_29 = arith.constant 0 : index
      %60 = memref.load %arg8[%c0_29] : memref<1xf32, #tpu.memory_space<smem>>
      memref.store %cst_28, %arg8[%c0_29] : memref<1xf32, #tpu.memory_space<smem>>
      %c0_i32_30 = arith.constant 0 : i32
      %c0_31 = arith.constant 0 : index
      %61 = memref.load %arg9[%c0_31] : memref<2xi32, #tpu.memory_space<smem>>
      memref.store %c0_i32_30, %arg9[%c0_31] : memref<2xi32, #tpu.memory_space<smem>>
      %c0_i32_32 = arith.constant 0 : i32
      %c1_33 = arith.constant 1 : index
      %62 = memref.load %arg9[%c1_33] : memref<2xi32, #tpu.memory_space<smem>>
      memref.store %c0_i32_32, %arg9[%c1_33] : memref<2xi32, #tpu.memory_space<smem>>
    } else {
    }
    %c0 = arith.constant 0 : index
    %c0_1 = arith.constant 0 : index
    %c0_2 = arith.constant 0 : index
    %c0_3 = arith.constant 0 : index
    %3 = vector.load %arg3[%c0, %c0_1, %c0_2, %c0_3] : memref<1x4x2x128xf32, #tpu.memory_space<vmem>>, vector<1x4x2x128xf32>
    %4 = vector.shape_cast %3 : vector<1x4x2x128xf32> to vector<4x2x128xf32>
    %c0_4 = arith.constant 0 : index
    %c0_5 = arith.constant 0 : index
    %c0_6 = arith.constant 0 : index
    %c0_7 = arith.constant 0 : index
    %5 = vector.load %arg4[%c0_4, %c0_5, %c0_6, %c0_7] : memref<1x1x2x128xi32, #tpu.memory_space<vmem>>, vector<1x1x2x128xi32>
    %6 = vector.shape_cast %5 : vector<1x1x2x128xi32> to vector<2x128xi32>
    %c255_i32 = arith.constant 255 : i32
    %7 = vector.broadcast %c255_i32 : i32 to vector<2x128xi32>
    %8 = arith.cmpi ne, %6, %7 : vector<2x128xi32>
    %c0_i32_8 = arith.constant 0 : i32
    %9 = vector.broadcast %c0_i32_8 : i32 to vector<2x128xi32>
    %10 = arith.select %8, %6, %9 : vector<2x128xi1>, vector<2x128xi32>
    %cst = arith.constant dense<0xFF800000> : vector<2x128xf32>
    %11 = vector.multi_reduction <maximumf>, %4, %cst [0] : vector<4x2x128xf32> to vector<2x128xf32>
    %12 = vector.shape_cast %11 : vector<2x128xf32> to vector<1x2x128xf32>
    %13 = vector.broadcast %12 : vector<1x2x128xf32> to vector<4x2x128xf32>
    %14 = arith.subf %4, %13 : vector<4x2x128xf32>
    %15 = tpu.iota {dimensions = array<i32: 0>} : vector<4x2x128xi32>
    %16 = vector.shape_cast %10 : vector<2x128xi32> to vector<1x2x128xi32>
    %17 = vector.broadcast %16 : vector<1x2x128xi32> to vector<4x2x128xi32>
    %18 = arith.cmpi eq, %15, %17 : vector<4x2x128xi32>
    %cst_9 = arith.constant 0.000000e+00 : f32
    %19 = vector.broadcast %cst_9 : f32 to vector<4x2x128xf32>
    %20 = arith.select %18, %14, %19 : vector<4x2x128xi1>, vector<4x2x128xf32>
    %cst_10 = arith.constant dense<0.000000e+00> : vector<2x128xf32>
    %21 = vector.multi_reduction <add>, %20, %cst_10 [0] : vector<4x2x128xf32> to vector<2x128xf32>
    %22 = math.exp %14 : vector<4x2x128xf32>
    %cst_11 = arith.constant dense<0.000000e+00> : vector<2x128xf32>
    %23 = vector.multi_reduction <add>, %22, %cst_11 [0] : vector<4x2x128xf32> to vector<2x128xf32>
    %24 = math.log %23 : vector<2x128xf32>
    %25 = arith.subf %24, %21 : vector<2x128xf32>
    %cst_12 = arith.constant 0.000000e+00 : f32
    %26 = vector.broadcast %cst_12 : f32 to vector<2x128xf32>
    %27 = arith.select %8, %25, %26 : vector<2x128xi1>, vector<2x128xf32>
    %28 = vector.shape_cast %27 : vector<2x128xf32> to vector<1x2x128xf32>
    %c0_13 = arith.constant 0 : index
    %c0_14 = arith.constant 0 : index
    %c0_15 = arith.constant 0 : index
    %29 = vector.load %arg5[%c0_13, %c0_14, %c0_15] : memref<1x2x128xf32, #tpu.memory_space<vmem>>, vector<1x2x128xf32>
    tpu.vector_store %arg5[%c0_13, %c0_14, %c0_15], %28 {strides = array<i32>} : memref<1x2x128xf32, #tpu.memory_space<vmem>>, vector<1x2x128xf32>,
    %cst_16 = arith.constant 0.356674939 : f32
    %30 = vector.broadcast %cst_16 : f32 to vector<2x128xf32>
    %31 = arith.cmpf ogt, %27, %30 : vector<2x128xf32>
    %c0_17 = arith.constant 0 : index
    %32 = memref.load %arg8[%c0_17] : memref<1xf32, #tpu.memory_space<smem>>
    %cst_18 = arith.constant 0.000000e+00 : f32
    %33 = vector.broadcast %cst_18 : f32 to vector<2x128xf32>
    %34 = arith.select %31, %27, %33 : vector<2x128xi1>, vector<2x128xf32>
    %35 = vector.shape_cast %34 : vector<2x128xf32> to vector<1x2x128xf32>
    %cst_19 = arith.constant dense<0.000000e+00> : vector<1xf32>
    %36 = vector.multi_reduction <add>, %35, %cst_19 [1, 2] : vector<1x2x128xf32> to vector<1xf32>
    %37 = vector.shape_cast %36 : vector<1xf32> to vector<1x1x1xf32>
    %38 = vector.extract %37[0, 0, 0] : f32 from vector<1x1x1xf32>
    %39 = arith.addf %32, %38 : f32
    %c0_20 = arith.constant 0 : index
    %40 = memref.load %arg8[%c0_20] : memref<1xf32, #tpu.memory_space<smem>>
    memref.store %39, %arg8[%c0_20] : memref<1xf32, #tpu.memory_space<smem>>
    %c0_21 = arith.constant 0 : index
    %41 = memref.load %arg9[%c0_21] : memref<2xi32, #tpu.memory_space<smem>>
    %42 = arith.extui %31 : vector<2x128xi1> to vector<2x128xi32>
    %43 = vector.shape_cast %42 : vector<2x128xi32> to vector<1x2x128xi32>
    %cst_22 = arith.constant dense<0> : vector<1xi32>
    %44 = vector.multi_reduction <add>, %43, %cst_22 [1, 2] : vector<1x2x128xi32> to vector<1xi32>
    %45 = vector.shape_cast %44 : vector<1xi32> to vector<1x1x1xi32>
    %46 = vector.extract %45[0, 0, 0] : i32 from vector<1x1x1xi32>
    %47 = arith.addi %41, %46 : i32
    %c0_23 = arith.constant 0 : index
    %48 = memref.load %arg9[%c0_23] : memref<2xi32, #tpu.memory_space<smem>>
    memref.store %47, %arg9[%c0_23] : memref<2xi32, #tpu.memory_space<smem>>
    %c1 = arith.constant 1 : index
    %49 = memref.load %arg9[%c1] : memref<2xi32, #tpu.memory_space<smem>>
    %50 = arith.extui %8 : vector<2x128xi1> to vector<2x128xi32>
    %51 = vector.shape_cast %50 : vector<2x128xi32> to vector<1x2x128xi32>
    %cst_24 = arith.constant dense<0> : vector<1xi32>
    %52 = vector.multi_reduction <add>, %51, %cst_24 [1, 2] : vector<1x2x128xi32> to vector<1xi32>
    %53 = vector.shape_cast %52 : vector<1xi32> to vector<1x1x1xi32>
    %54 = vector.extract %53[0, 0, 0] : i32 from vector<1x1x1xi32>
    %55 = arith.addi %49, %54 : i32
    %c1_25 = arith.constant 1 : index
    %56 = memref.load %arg9[%c1_25] : memref<2xi32, #tpu.memory_space<smem>>
    memref.store %55, %arg9[%c1_25] : memref<2xi32, #tpu.memory_space<smem>>
    %c0_i32_26 = arith.constant 0 : i32
    %57 = arith.cmpi eq, %arg2, %c0_i32_26 : i32
    %58 = arith.extui %57 : i1 to i32
    %c0_i32_27 = arith.constant 0 : i32
    %59 = arith.cmpi ne, %58, %c0_i32_27 : i32
    scf.if %59 {
      %60 = tpu.iota {dimensions = array<i32: 2>} : vector<1x1x8x128xi32>
      %61 = tpu.iota {dimensions = array<i32: 3>} : vector<1x1x8x128xi32>
      %c0_i32_28 = arith.constant 0 : i32
      %62 = vector.broadcast %c0_i32_28 : i32 to vector<1x1x8x128xi32>
      %63 = arith.cmpi eq, %60, %62 : vector<1x1x8x128xi32>
      %c0_i32_29 = arith.constant 0 : i32
      %64 = vector.broadcast %c0_i32_29 : i32 to vector<1x1x8x128xi32>
      %65 = arith.cmpi eq, %61, %64 : vector<1x1x8x128xi32>
      %66 = arith.andi %63, %65 : vector<1x1x8x128xi1>
      %c0_i32_30 = arith.constant 0 : i32
      %67 = vector.broadcast %c0_i32_30 : i32 to vector<1x1x8x128xi32>
      %68 = arith.cmpi eq, %60, %67 : vector<1x1x8x128xi32>
      %c1_i32 = arith.constant 1 : i32
      %69 = vector.broadcast %c1_i32 : i32 to vector<1x1x8x128xi32>
      %70 = arith.cmpi eq, %61, %69 : vector<1x1x8x128xi32>
      %71 = arith.andi %68, %70 : vector<1x1x8x128xi1>
      %c0_31 = arith.constant 0 : index
      %72 = memref.load %arg8[%c0_31] : memref<1xf32, #tpu.memory_space<smem>>
      %cst_32 = arith.constant 0.000000e+00 : f32
      %73 = vector.broadcast %72 : f32 to vector<1x1x8x128xf32>
      %74 = vector.broadcast %cst_32 : f32 to vector<1x1x8x128xf32>
      %75 = arith.select %66, %73, %74 : vector<1x1x8x128xi1>, vector<1x1x8x128xf32>
      %c0_33 = arith.constant 0 : index
      %c0_34 = arith.constant 0 : index
      %c0_35 = arith.constant 0 : index
      %c0_36 = arith.constant 0 : index
      %76 = vector.load %arg6[%c0_33, %c0_34, %c0_35, %c0_36] : memref<1x1x8x128xf32, #tpu.memory_space<vmem>>, vector<1x1x8x128xf32>
      tpu.vector_store %arg6[%c0_33, %c0_34, %c0_35, %c0_36], %75 {strides = array<i32>} : memref<1x1x8x128xf32, #tpu.memory_space<vmem>>, vector<1x1x8x128xf32>,
      %c0_37 = arith.constant 0 : index
      %77 = memref.load %arg9[%c0_37] : memref<2xi32, #tpu.memory_space<smem>>
      %c1_38 = arith.constant 1 : index
      %78 = memref.load %arg9[%c1_38] : memref<2xi32, #tpu.memory_space<smem>>
      %c0_i32_39 = arith.constant 0 : i32
      %79 = vector.broadcast %78 : i32 to vector<1x1x8x128xi32>
      %80 = vector.broadcast %c0_i32_39 : i32 to vector<1x1x8x128xi32>
      %81 = arith.select %71, %79, %80 : vector<1x1x8x128xi1>, vector<1x1x8x128xi32>
      %82 = vector.broadcast %77 : i32 to vector<1x1x8x128xi32>
      %83 = arith.select %66, %82, %81 : vector<1x1x8x128xi1>, vector<1x1x8x128xi32>
      %c0_40 = arith.constant 0 : index
      %c0_41 = arith.constant 0 : index
      %c0_42 = arith.constant 0 : index
      %c0_43 = arith.constant 0 : index
      %84 = vector.load %arg7[%c0_40, %c0_41, %c0_42, %c0_43] : memref<1x1x8x128xi32, #tpu.memory_space<vmem>>, vector<1x1x8x128xi32>
      tpu.vector_store %arg7[%c0_40, %c0_41, %c0_42, %c0_43], %83 {strides = array<i32>} : memref<1x1x8x128xi32, #tpu.memory_space<vmem>>, vector<1x1x8x128xi32>,
    } else {
    }
    return
  }
  func.func @transform_0(%arg0: i32, %arg1: i32, %arg2: i32) -> (i32, i32, i32, i32) {
    %c1_i32 = arith.constant 1 : i32
    %0 = arith.muli %arg1, %c1_i32 : i32
    %1 = arith.addi %0, %arg2 : i32
    %c0_i32 = arith.constant 0 : i32
    %c0_i32_0 = arith.constant 0 : i32
    %c0_i32_1 = arith.constant 0 : i32
    return %arg0, %c0_i32, %1, %c0_i32_0 : i32, i32, i32, i32
  }
  func.func @transform_1(%arg0: i32, %arg1: i32, %arg2: i32) -> (i32, i32, i32, i32) {
    %c1_i32 = arith.constant 1 : i32
    %0 = arith.muli %arg1, %c1_i32 : i32
    %1 = arith.addi %0, %arg2 : i32
    %c0_i32 = arith.constant 0 : i32
    %c0_i32_0 = arith.constant 0 : i32
    %c0_i32_1 = arith.constant 0 : i32
    return %arg0, %c0_i32, %1, %c0_i32_0 : i32, i32, i32, i32
  }
  func.func @transform_2(%arg0: i32, %arg1: i32, %arg2: i32) -> (i32, i32, i32) {
    %c1_i32 = arith.constant 1 : i32
    %0 = arith.muli %arg1, %c1_i32 : i32
    %1 = arith.addi %0, %arg2 : i32
    %c0_i32 = arith.constant 0 : i32
    %c0_i32_0 = arith.constant 0 : i32
    return %arg0, %1, %c0_i32 : i32, i32, i32
  }
  func.func @transform_3(%arg0: i32, %arg1: i32, %arg2: i32) -> (i32, i32, i32, i32) {
    %c0_i32 = arith.constant 0 : i32
    %c0_i32_0 = arith.constant 0 : i32
    %c0_i32_1 = arith.constant 0 : i32
    return %arg0, %arg1, %c0_i32, %c0_i32_0 : i32, i32, i32, i32
  }
  func.func @transform_4(%arg0: i32, %arg1: i32, %arg2: i32) -> (i32, i32, i32, i32) {
    %c0_i32 = arith.constant 0 : i32
    %c0_i32_0 = arith.constant 0 : i32
    %c0_i32_1 = arith.constant 0 : i32
    return %arg0, %arg1, %c0_i32, %c0_i32_0 : i32, i32, i32, i32
  }
}

</mosaic_0001>

<bundles_post_ra>
// kernel: ohem_ce_loss.1
= control target key start
LH: loop header
LB: loop body
LE: loop exit
PB: predicated region body
PF: predicated region fallthrough
CT: control target
= control target key end

     0   :  { %s759_s15 = smov 0   ;;  %s761_s16 = smov 0   ;;  %s832_s0 = inlined_call_operand.vmem [shape: f32[2,4,2,128], index: 0, kind: input, shape index: {}]   ;;  %s833_s1 = inlined_call_operand.vmem [shape: s32[2,1,2,128], index: 1, kind: input, shape index: {}]   ;;  %s834_s2 = inlined_call_operand.vmem [shape: f32[2,2,128], index: 2, kind: output, shape index: {0}]   ;;  %s835_s3 = inlined_call_operand.vmem [shape: f32[2,1,8,128], index: 3, kind: output, shape index: {1}]   ;;  %s836_s4 = inlined_call_operand.vmem [shape: s32[2,1,8,128], index: 4, kind: output, shape index: {2}]  }
   0x1   :  { %s763_s17 = smov 0  }
   0x2 LB: > { %s34_s18 = sadd.s32 1, %s727_s16  ;;  %p656_p0 = scmp.ge.s32.totalorder %s731_s17, 1  ;;  %s731_s17 = sphi %s763_s17, %s15_s17   ;;  %s727_s16 = sphi %s761_s16, %s838_s16   ;;  %s723_s15 = sphi %s759_s15, %s837_s15  }
   0x3   : > { %p36_p1 = scmp.ge.s32.totalorder %s34_s18, 2  ;;  %p221_p2 = scmp.lt.s32.totalorder %s731_s17, 3 }
   0x5   : > { %s840_s18 = smov (%p36_p1, %s34_s18), 0  ;;  %p222_p3 = pnand %p656_p0, %p221_p2 }
   0x6   : > { %p277_p4 = scmp.lt.s32.totalorder (!%p222_p3), %s723_s15, 1  ;;  %vm335_vm0 = vcmask (!%p222_p3), 1041408   ;;  %v733_v46 = vmov (!%p222_p3), 0  }
   0x7   : > { %225 = sbr.rel (%p222_p3) target bundleno = 288 (0x120), region = 28 }
   0xe   : > { %s842_s15 = smov (!%p277_p4, %s723_s15), 1 }
   0xf   : > { %s780_s19 = sshll.u32 %s842_s15, 3  ;;  %s659_s23 = sshll.u32 %s842_s15, 1 }
  0x10   : > { %s284_s22 = scalar_lea.vmem %s832_s0, %s780_s19  ;;  %s293_s26 = scalar_lea.vmem %s833_s1, %s659_s23 }
  0x11   : > { %v328_v0 = vld [vmem:[%s284_s22] sm:$0x3]  ;;  %v329_v1 = vld [vmem:[%s284_s22 + $0x2] sm:$0x3]  ;;  %v330_v2 = vld [vmem:[%s284_s22 + $0x4] sm:$0x3]  ;;  %s302_s29 = scalar_lea.vmem %s834_s2, %s659_s23  ;;  %s310_s6 = scalar_lea.vmem %s835_s3, %s780_s19 }
  0x12   : > { %v331_v3 = vld [vmem:[%s284_s22 + $0x6] sm:$0x3]  ;;  %v336_v4 = vsel %vm335_vm0, %v328_v0, -inf  ;;  %v337_v5 = vsel %vm335_vm0, %v329_v1, -inf  ;;  %v338_v6 = vsel %vm335_vm0, %v330_v2, -inf  ;;  %s317_s12 = scalar_lea.vmem %s836_s4, %s780_s19 }
  0x13   : > { %v339_v7 = vsel %vm335_vm0, %v331_v3, -inf  ;;  %v340_v8 = vmax.f32 %v336_v4, %v337_v5  ;;  %v332_v19 = vld [vmem:[%s293_s26] sm:$0x3] }
  0x14   : > { %v341_v9 = vmax.f32 %v338_v6, %v339_v7  ;;  %vm333_vm1 = vcmp.ne.s32.totalorder %v332_v19, 255 }
  0x15   : > { %v334_v20 = vsel %vm333_vm1, %v332_v19, 0  ;;  %v424_v47 = vsel %vm333_vm1, 1, %v733_v46 }
  0x16   : > { %v342_v10 = vmax.f32 %v340_v8, %v341_v9  ;;  %vm347_vm2 = vcmp.eq.s32.totalorder %v334_v20, 0  ;;  %vm348_vm3 = vcmp.eq.s32.totalorder %v334_v20, 1  ;;  %vm349_vm4 = vcmp.eq.s32.totalorder %v334_v20, 2 }
  0x17   : > { %vm350_vm5 = vcmp.eq.s32.totalorder %v334_v20, 3  ;;  %v425_v49 = vsel %vm335_vm0, %v424_v47, 0 }
  0x18   : > { %v343_v11 = vsub.f32 %v328_v0, %v342_v10  ;;  %v344_v12 = vsub.f32 %v329_v1, %v342_v10  ;;  %v345_v13 = vsub.f32 %v330_v2, %v342_v10  ;;  %v346_v14 = vsub.f32 %v331_v3, %v342_v10 }
  0x19   : > { %v427_v54 = vshrl.u32 %v425_v49, 16  ;;  %v426_v55 = vand.u32 65535, %v425_v49 }
  0x1a   : > { %v362_v15 = vmul.f32 1.442695, %v343_v11  ;;  %v364_v16 = vmul.f32 1.442695, %v344_v12  ;;  %v366_v17 = vmul.f32 1.442695, %v345_v13 }
  0x1b   : > { %v368_v18 = vmul.f32 1.442695, %v346_v14  ;;  %v351_v29 = vsel %vm347_vm2, %v343_v11, 0.0  ;;  %v352_v30 = vsel %vm348_vm3, %v344_v12, 0.0  ;;  %v353_v36 = vsel %vm349_vm4, %v345_v13, 0.0 }
  0x1c   : > { %699 = vpow2.f32 %v362_v15  ;;  %v355_v33 = vsel %vm335_vm0, %v351_v29, 0.0  ;;  %v356_v34 = vsel %vm335_vm0, %v352_v30, 0.0  ;;  %v358_v38 = vsel %vm335_vm0, %v353_v36, 0.0 }
  0x1d   : > { %701 = vpow2.f32 %v364_v16  ;;  %v357_v37 = vadd.f32 %v356_v34, %v355_v33  ;;  %v354_v39 = vsel %vm350_vm5, %v346_v14, 0.0  ;;  %v429_v58 = vcvt.s32.f32 %v427_v54 }
  0x1e   : > { %703 = vpow2.f32 %v366_v17  ;;  %v360_v41 = vsel %vm335_vm0, %v354_v39, 0.0  ;;  %v428_v59 = vcvt.s32.f32 %v426_v55  ;;  %v451_v29 = vlaneseq }
  0x1f   : > { %705 = vpow2.f32 %v368_v18  ;;  %v359_v40 = vadd.f32 %v358_v38, %v357_v37 }
  0x20   : > { %v452_v30 = vshrl.u32 %v451_v29, 7 }
  0x21   : > { %v361_v42 = vadd.f32 %v360_v41, %v359_v40 }
  0x22   : > { %vm455_vm7 = vcmp.eq.s32.totalorder %v452_v30, 0 }
  0x26   : > { %v700_v21 = vpop.eup %699 }
  0x27   : > { %v702_v22 = vpop.eup %701  ;;  %v370_v23 = vsel %vm335_vm0, %v700_v21, 0.0 }
  0x28   : > { %v704_v24 = vpop.eup %703  ;;  %v371_v25 = vsel %vm335_vm0, %v702_v22, 0.0 }
  0x29   : > { %v706_v26 = vpop.eup %705  ;;  %v372_v27 = vadd.f32 %v371_v25, %v370_v23  ;;  %v373_v28 = vsel %vm335_vm0, %v704_v24, 0.0 }
  0x2a   : > { %v375_v31 = vsel %vm335_vm0, %v706_v26, 0.0 }
  0x2b   : > { %v374_v32 = vadd.f32 %v373_v28, %v372_v27 }
  0x2d   : > { %v376_v35 = vadd.f32 %v375_v31, %v374_v32  ;;  %v454_v31 = vand.u32 127, %v451_v29 }
  0x2f   : > { %707 = vlog2.f32 %v376_v35  ;;  %vm456_vm8 = vcmp.eq.s32.totalorder %v454_v31, 0  ;;  %vm458_vm9 = vcmp.eq.s32.totalorder %v454_v31, 1 }
  0x30   : > { %vm457_vm10 = vmand %vm455_vm7, %vm456_vm8 }
  0x31   : > { %vm459_vm11 = vmand %vm455_vm7, %vm458_vm9 }
  0x39   : > { %v708_v43 = vpop.eup %707 }
  0x3a   : > { %v378_v44 = vmul.f32 0.6931472, %v708_v43 }
  0x3c   : > { %v379_v45 = vsub.f32 %v378_v44, %v361_v42 }
  0x3e   : > { %v380_v48 = vsel %vm333_vm1, %v379_v45, 0.0 }
  0x3f   : > { %vm382_vm6 = vcmp.gt.f32.partialorder %v380_v48, 0.35667494  ;;  %381 = vst [vmem:[%s302_s29] sm:$0x3] %v380_v48 }
  0x40   : > { %v399_v50 = vsel %vm382_vm6, 1, %v733_v46  ;;  %v384_v60 = vsel %vm382_vm6, %v380_v48, 0.0 }
  0x41   : > { %v400_v51 = vsel %vm335_vm0, %v399_v50, 0  ;;  %v385_v61 = vsel %vm335_vm0, %v384_v60, 0.0 }
  0x42   : > { %v402_v52 = vshrl.u32 %v400_v51, 16  ;;  %v401_v53 = vand.u32 65535, %v400_v51 }
  0x44   : > { %v404_v56 = vcvt.s32.f32 %v402_v52  ;;  %v403_v57 = vcvt.s32.f32 %v401_v53 }
  0x46   : > { %407 = vadd.xlane.f32.xlu0 %v404_v56  ;;  %405 = vadd.xlane.f32.xlu1 %v403_v57 }
  0x4a   : > { %432 = vadd.xlane.f32.xlu0 %v429_v58  ;;  %430 = vadd.xlane.f32.xlu1 %v428_v59 }
  0x4e   : > { %386 = vadd.xlane.f32.xlu0 %v385_v61 }
  0xd3   : > { %v408_v62 = vpop.xlane.xlu0 %407  ;;  %v406_v63 = vpop.xlane.xlu1 %405 }
  0xd4   : > { %v410_v0 = vcvt.f32.s32 %v408_v62  ;;  %v409_v1 = vcvt.f32.s32 %v406_v63 }
  0xd6   : > { %v411_v2 = vshll.u32 %v410_v0, 16 }
  0xd7   : > { %v433_v3 = vpop.xlane.xlu0 %432  ;;  %v431_v4 = vpop.xlane.xlu1 %430 }
  0xd8   : > { %v412_v5 = vadd.s32 %v411_v2, %v409_v1  ;;  %v435_v6 = vcvt.f32.s32 %v433_v3  ;;  %v434_v7 = vcvt.f32.s32 %v431_v4 }
  0xda   : > { %v413_v8 = vrot.slane %v412_v5, 4  ;;  %v436_v9 = vshll.u32 %v435_v6, 16 }
  0xdb   : > { %v387_v10 = vpop.xlane.xlu0 %386 }
  0xdc   : > { %v414_v11 = vadd.s32 %v413_v8, %v412_v5  ;;  %v437_v12 = vadd.s32 %v436_v9, %v434_v7  ;;  %v388_v13 = vrot.slane %v387_v10, 4 }
  0xde   : > { %v438_v14 = vrot.slane %v437_v12, 4  ;;  %v389_v15 = vadd.f32 %v388_v13, %v387_v10  ;;  %v415_v16 = vrot.slane %v414_v11, 2 }
  0xe0   : > { %v439_v17 = vadd.s32 %v438_v14, %v437_v12  ;;  %v390_v18 = vrot.slane %v389_v15, 2  ;;  %v416_v19 = vadd.s32 %v415_v16, %v414_v11 }
  0xe2   : > { %v391_v20 = vadd.f32 %v390_v18, %v389_v15  ;;  %v440_v21 = vrot.slane %v439_v17, 2  ;;  %v417_v22 = vrot.slane %v416_v19, 1 }
  0xe4   : > { %v392_v23 = vrot.slane %v391_v20, 1  ;;  %v441_v24 = vadd.s32 %v440_v21, %v439_v17  ;;  %v418_v27 = vadd.s32 %v417_v22, %v416_v19 }
  0xe6   : > { %v393_v25 = vadd.f32 %v392_v23, %v391_v20  ;;  %v442_v26 = vrot.slane %v441_v24, 1 }
  0xe8   : > { %668 = vpush %v393_v25  ;;  %v443_v28 = vadd.s32 %v442_v26, %v441_v24 }
  0xe9   : > { %670 = vpush %v418_v27 }
  0xea   : > { %672 = vpush %v443_v28 }
 0x119   : > { %s669_s7 = spop %668 }
 0x11a   : > { %v461_v32 = vstv %s669_s7  ;;  %s671_s8 = spop %670 }
 0x11b   : > { %v462_v33 = vsel %vm457_vm10, %v461_v32, 0.0  ;;  %s673_s9 = spop %672  ;;  %v468_v35 = vstv %s671_s8 }
 0x11c   : > { %463 = vst [vmem:[%s310_s6] sm:$0xff] %v462_v33  ;;  %v466_v34 = vstv %s673_s9 }
 0x11d   : > { %v467_v36 = vsel %vm459_vm11, %v466_v34, 0 }
 0x11e   : > { %v469_v37 = vsel %vm457_vm10, %v468_v35, %v467_v36 }
 0x11f   : > { %470 = vst [vmem:[%s317_s12] sm:$0xff] %v469_v37 }
 0x120 PF: > { %s15_s17 = sadd.s32 1, %s731_s17   ;;  %s837_s15 = smov %s727_s16 }
 0x121   : > { %p12_p5 = scmp.ge.s32.totalorder %s15_s17, 4   ;;  %s838_s16 = smov %s840_s18 }
 0x123   :  { %14 = sbr.rel (!%p12_p5) target bundleno = 2 (0x2), region = 99 }

</bundles_post_ra>
